<compile_context>
chip_gen: v7x
topology: tpu7x:2x2x1
jax: 0.10.0
libtpu: 0.0.40
codegen_flags: <defaults>
</compile_context>

<pallas_src>
import functools
import math

import jax
import jax.numpy as jnp
from jax import lax
from jax.experimental import pallas as pl
from jax.experimental.pallas import tpu as pltpu

LRELU_SLOPE = 0.1
PERIODS = [2, 3, 5, 7, 11, 13, 19, 23, 29]

TK_MAX = 512  # reduction tile (fixed so weights can be pre-padded at init)


def _round_up(x, m):
    return ((x + m - 1) // m) * m


def _pick_config():
    """Per-generation M-tile / VMEM budget (v7x: 64 MiB VMEM, v5e/v6e: 128 MiB)."""
    try:
        vmem = pltpu.get_tpu_info().vmem_capacity_bytes
    except Exception:
        vmem = 64 * 1024 * 1024
    if vmem >= 96 * 1024 * 1024:
        return 1024, 96 * 1024 * 1024      # v5e / v6e: exploit 128 MiB VMEM
    return 512, 48 * 1024 * 1024           # v7x: leave headroom for double buffers


TM_MAX, VMEM_LIMIT = _pick_config()


def get_padding(kernel_size, dilation=1):
    return (kernel_size * dilation - dilation) // 2


def _tile_dim(dim, tile_max):
    """Single full-extent block if it fits, else tile_max tiles (pad up)."""
    if dim <= tile_max:
        return dim, dim
    return tile_max, _round_up(dim, tile_max)


def _tile_n(n):
    """Lane-dense (multiple of 128) output tiles unless Cout_g is tiny."""
    if n < 32:
        return n, n              # grouped layers with Cout_g in {1,4,16}
    n_pad = _round_up(n, 128)
    tn = 256 if n_pad % 256 == 0 else 128
    return tn, n_pad


# ---------------------------------------------------------------------------
# Pallas kernel: tiled grouped matmul + bias (+ fused LeakyReLU)
# ---------------------------------------------------------------------------
def _gmm_kernel(p_ref, w_ref, b_ref, o_ref, acc_ref, *, apply_lrelu):
    k = pl.program_id(3)

    @pl.when(k == 0)
    def _init():
        acc_ref[...] = jnp.zeros_like(acc_ref)

    acc_ref[...] += jnp.dot(p_ref[0], w_ref[0], preferred_element_type=jnp.float32)

    @pl.when(k == pl.num_programs(3) - 1)
    def _finalize():
        acc = acc_ref[...] + b_ref[0]
        if apply_lrelu:
            acc = jnp.where(acc >= 0.0, acc, LRELU_SLOPE * acc)
        o_ref[0] = acc.astype(o_ref.dtype)


def _grouped_matmul(pat, layer, apply_lrelu):
    """pat: (G, M, Kd) bf16; returns (G, M, Cout_g) f32."""
    G, M, Kd = pat.shape
    TK, Kd_pad = layer["TK"], layer["Kd_pad"]
    TN, N_pad = layer["TN"], layer["N_pad"]
    TM, M_pad = _tile_dim(M, TM_MAX)

    if M_pad != M or Kd_pad != Kd:
        pat = jnp.pad(pat, ((0, 0), (0, M_pad - M), (0, Kd_pad - Kd)))

    grid_spec = pltpu.PrefetchScalarGridSpec(
        num_scalar_prefetch=0,
        grid=(G, M_pad // TM, N_pad // TN, Kd_pad // TK),
        in_specs=[
            pl.BlockSpec((1, TM, TK), lambda g, m, n, k: (g, m, k)),
            pl.BlockSpec((1, TK, TN), lambda g, m, n, k: (g, k, n)),
            pl.BlockSpec((1, 1, TN), lambda g, m, n, k: (g, 0, n)),
        ],
        out_specs=pl.BlockSpec((1, TM, TN), lambda g, m, n, k: (g, m, n)),
        scratch_shapes=[pltpu.VMEM((TM, TN), jnp.float32)],
    )
    out = pl.pallas_call(
        functools.partial(_gmm_kernel, apply_lrelu=apply_lrelu),
        out_shape=jax.ShapeDtypeStruct((G, M_pad, N_pad), jnp.float32),
        grid_spec=grid_spec,
        compiler_params=pltpu.CompilerParams(
            dimension_semantics=("parallel", "parallel", "parallel", "arbitrary"),
            vmem_limit_bytes=VMEM_LIMIT,
        ),
    )(pat, layer["w_mat"], layer["bias"])
    return out[:, :M, :layer["Cout_g"]]


# ---------------------------------------------------------------------------
# Conv wrapper: channel-last strided-slice im2col + Pallas grouped matmul
# ---------------------------------------------------------------------------
def conv1d_cl(x, layer, apply_lrelu):
    """x: (B, T, Cin) channel-last. Returns (B, T_out, Cout) channel-last f32."""
    B, T, Cin = x.shape
    K, stride, pad, G = layer["K"], layer["stride"], layer["pad"], layer["groups"]
    Cin_g, Cout_g, Cout = layer["Cin_g"], layer["Cout_g"], layer["Cout"]

    xp = jnp.pad(x, ((0, 0), (pad, pad), (0, 0))).astype(jnp.bfloat16)
    Tp = T + 2 * pad
    T_out = (Tp - K) // stride + 1
    span = stride * (T_out - 1) + 1
    # TODO(synk): for the K=41 grouped DiscS layers an in-kernel tap loop
    # (accumulating K shifted matmuls) would avoid materializing the Kx patch
    # tensor; strided slices below at least avoid the XLA gather.
    taps = [lax.slice(xp, (0, k, 0), (B, k + span, Cin), (1, stride, 1))
            for k in range(K)]
    patches = jnp.stack(taps, axis=2)                      # (B, T_out, K, Cin) bf16

    if G == 1:
        pat = patches.reshape(1, B * T_out, K * Cin)
    else:
        pat = (patches.reshape(B, T_out, K, G, Cin_g)
               .transpose(3, 0, 1, 2, 4)
               .reshape(G, B * T_out, K * Cin_g))

    out = _grouped_matmul(pat, layer, apply_lrelu)         # (G, B*T_out, Cout_g)
    if G == 1:
        return out.reshape(B, T_out, Cout)
    return (out.reshape(G, B, T_out, Cout_g)
            .transpose(1, 2, 0, 3)
            .reshape(B, T_out, Cout))


# ---------------------------------------------------------------------------
# Parameter init (weight_norm at init == plain conv weights). Matmul-layout
# weights (bf16) and padded bias (f32) are precomputed ONCE here.
# ---------------------------------------------------------------------------
def _prep_conv(w, b, stride, pad, groups):
    """w: (Cout, Cin_g, K) PyTorch layout."""
    Cout, Cin_g, K = w.shape
    G = groups
    Cout_g = Cout // G
    Kd = K * Cin_g
    # Kd ordering is K-major / Cin_g-minor to match the stacked-tap patches.
    w_mat = (w.reshape(G, Cout_g, Cin_g, K)
             .transpose(0, 3, 2, 1)
             .reshape(G, Kd, Cout_g))
    TK, Kd_pad = _tile_dim(Kd, TK_MAX)
    TN, N_pad = _tile_n(Cout_g)
    w_mat = jnp.pad(w_mat, ((0, 0), (0, Kd_pad - Kd), (0, N_pad - Cout_g)))
    bias = jnp.pad(b.reshape(G, 1, Cout_g), ((0, 0), (0, 0), (0, N_pad - Cout_g)))
    return dict(w_mat=w_mat.astype(jnp.bfloat16), bias=bias.astype(jnp.float32),
                K=K, stride=stride, pad=pad, groups=G, Cin_g=Cin_g,
                Cout_g=Cout_g, Cout=Cout, Kd=Kd, Kd_pad=Kd_pad,
                TK=TK, TN=TN, N_pad=N_pad)


def _init_conv(key, cout, cin_g, *ks):
    kw, kb = jax.random.split(key)
    fan_in = cin_g * math.prod(ks)
    w = jax.random.normal(kw, (cout, cin_g) + tuple(ks), jnp.float32) / jnp.sqrt(
        float(fan_in))
    b = jax.random.normal(kb, (cout,), jnp.float32) * 0.01
    return w, b


def init_disc_p(key, kernel_size=5, stride=3):
    keys = jax.random.split(key, 6)
    chans = [(1, 32), (32, 128), (128, 512), (512, 1024), (1024, 1024)]
    pad = get_padding(5, 1)
    convs = []
    for i, (ci, co) in enumerate(chans):
        s = stride if i < 4 else 1
        w, b = _init_conv(keys[i], co, ci, kernel_size, 1)
        convs.append(_prep_conv(w[..., 0], b, s, pad, 1))     # (K,1) kernel -> 1D along H
    wp, bp = _init_conv(keys[5], 1, 1024, 3, 1)
    return {"convs": convs, "conv_post": _prep_conv(wp[..., 0], bp, 1, 1, 1)}


def init_disc_s(key):
    cfg = [
        (1, 16, 15, 1, 7, 1),
        (16, 64, 41, 4, 20, 4),
        (64, 256, 41, 4, 20, 16),
        (256, 1024, 41, 4, 20, 64),
        (1024, 1024, 41, 4, 20, 256),
        (1024, 1024, 5, 1, 2, 1),
    ]
    keys = jax.random.split(key, len(cfg) + 1)
    convs = []
    for k, (ci, co, K, s, p, g) in zip(keys[:-1], cfg):
        w, b = _init_conv(k, co, ci // g, K)
        convs.append(_prep_conv(w, b, s, p, g))
    wp, bp = _init_conv(keys[-1], 1, 1024, 3)
    return {"convs": convs, "conv_post": _prep_conv(wp, bp, 1, 1, 1)}


def init_mpd(key):
    keys = jax.random.split(key, 1 + len(PERIODS))
    return {"disc_s": init_disc_s(keys[0]),
            "disc_p": [init_disc_p(k) for k in keys[1:]]}


# ---------------------------------------------------------------------------
# Forward passes (activations chained channel-last; fmaps emitted in PyTorch
# NCW / NCHW layout)
# ---------------------------------------------------------------------------
def disc_p_forward(params, x, period):
    fmap = []
    b, c, t = x.shape
    if t % period != 0:
        n_pad = period - t % period
        x = jnp.pad(x, ((0, 0), (0, 0), (0, n_pad)), mode="reflect")
        t = t + n_pad
    H, W = t // period, period
    # (B, 1, H, W) NCHW -> fold W into batch, channel-last: (B*W, H, C)
    xcl = x.reshape(b, c, H, W).transpose(0, 3, 2, 1).reshape(b * W, H, c)
    for layer in params["convs"]:
        xcl = conv1d_cl(xcl, layer, apply_lrelu=True)          # (B*W, H', Cout)
        Hc, Cc = xcl.shape[1], xcl.shape[2]
        fmap.append(xcl.reshape(b, W, Hc, Cc).transpose(0, 3, 2, 1))
    xcl = conv1d_cl(xcl, params["conv_post"], apply_lrelu=False)
    Hc, Cc = xcl.shape[1], xcl.shape[2]
    last = xcl.reshape(b, W, Hc, Cc).transpose(0, 3, 2, 1)     # (B, 1, H', W)
    fmap.append(last)
    return last.reshape(b, -1), fmap


def disc_s_forward(params, x):
    fmap = []
    b = x.shape[0]
    xcl = x.transpose(0, 2, 1)                                 # (B, T, C)
    for layer in params["convs"]:
        xcl = conv1d_cl(xcl, layer, apply_lrelu=True)
        fmap.append(xcl.transpose(0, 2, 1))
    xcl = conv1d_cl(xcl, params["conv_post"], apply_lrelu=False)
    last = xcl.transpose(0, 2, 1)                              # (B, 1, T')
    fmap.append(last)
    return last.reshape(b, -1), fmap


def mpd_forward(params, y, y_hat):
    # TODO(synk): MultiScaleSTFTDiscriminator comes from an external package
    # (encodec) and is not defined in the source file; it is omitted here.
    B = y.shape[0]
    yy = jnp.concatenate([y, y_hat], axis=0)   # run y and y_hat in one batch
    y_d_rs, y_d_gs, fmap_rs, fmap_gs = [], [], [], []

    def _split(x, fmap):
        return x[:B], x[B:], [f[:B] for f in fmap], [f[B:] for f in fmap]

    x, fm = disc_s_forward(params["disc_s"], yy)
    r, g, fr, fg = _split(x, fm)
    y_d_rs.append(r); y_d_gs.append(g); fmap_rs.append(fr); fmap_gs.append(fg)

    for period, p_params in zip(PERIODS, params["disc_p"]):
        x, fm = disc_p_forward(p_params, yy, period)
        r, g, fr, fg = _split(x, fm)
        y_d_rs.append(r); y_d_gs.append(g); fmap_rs.append(fr); fmap_gs.append(fg)

    return y_d_rs, y_d_gs, fmap_rs, fmap_gs


# ---------------------------------------------------------------------------
if __name__ == "__main__":
    key = jax.random.PRNGKey(0)
    k_params, k_y, k_yh = jax.random.split(key, 3)

    B, C, T = 2, 1, 64
    y = jax.random.normal(k_y, (B, C, T), jnp.float32)
    y_hat = jax.random.normal(k_yh, (B, C, T), jnp.float32)

    params = init_mpd(k_params)

    outs = mpd_forward(params, y, y_hat)
    jax.block_until_ready(outs)

    print("KERNEL_OK")
</pallas_src>

<mosaic_0001>
module attributes {stable_mosaic.version = 11 : i64} {
  func.func @_gmm_kernel(%arg0: i32, %arg1: i32, %arg2: i32, %arg3: i32, %arg4: memref<1x256x15xbf16, #tpu.memory_space<vmem>>, %arg5: memref<1x15x16xbf16, #tpu.memory_space<vmem>>, %arg6: memref<1x1x16xf32, #tpu.memory_space<vmem>>, %arg7: memref<1x256x16xf32, #tpu.memory_space<vmem>>, %arg8: memref<256x16xf32, #tpu.memory_space<vmem>>) attributes {dimension_semantics = [#tpu.dimension_semantics<parallel>, #tpu.dimension_semantics<parallel>, #tpu.dimension_semantics<parallel>, #tpu.dimension_semantics<arbitrary>], iteration_bounds = array<i64: 1, 1, 1, 1>, scalar_prefetch = 0 : i64, scratch_operands = 1 : i64, tpu.core_type = #tpu.core_type<tc>, window_params = [{transform_indices = @transform_0, window_bounds = array<i64: 1, 256, 15>}, {transform_indices = @transform_1, window_bounds = array<i64: 1, 15, 16>}, {transform_indices = @transform_2, window_bounds = array<i64: 1, 1, 16>}, {transform_indices = @transform_3, window_bounds = array<i64: 1, 256, 16>}]} {
    %c0_i32 = arith.constant 0 : i32
    %0 = arith.cmpi eq, %arg3, %c0_i32 : i32
    %1 = arith.extui %0 : i1 to i32
    %c0_i32_0 = arith.constant 0 : i32
    %2 = arith.cmpi ne, %1, %c0_i32_0 : i32
    scf.if %2 {
      %cst_12 = arith.constant 0.000000e+00 : f32
      %14 = vector.broadcast %cst_12 : f32 to vector<256x16xf32>
      %c0_13 = arith.constant 0 : index
      %c0_14 = arith.constant 0 : index
      %15 = vector.load %arg8[%c0_13, %c0_14] : memref<256x16xf32, #tpu.memory_space<vmem>>, vector<256x16xf32>
      tpu.vector_store %arg8[%c0_13, %c0_14], %14 {strides = array<i32>} : memref<256x16xf32, #tpu.memory_space<vmem>>, vector<256x16xf32>,
    } else {
    }
    %c0 = arith.constant 0 : index
    %c0_1 = arith.constant 0 : index
    %3 = vector.load %arg8[%c0, %c0_1] : memref<256x16xf32, #tpu.memory_space<vmem>>, vector<256x16xf32>
    %c0_2 = arith.constant 0 : index
    %c0_3 = arith.constant 0 : index
    %c0_4 = arith.constant 0 : index
    %4 = vector.load %arg4[%c0_2, %c0_3, %c0_4] : memref<1x256x15xbf16, #tpu.memory_space<vmem>>, vector<1x256x15xbf16>
    %5 = vector.shape_cast %4 : vector<1x256x15xbf16> to vector<256x15xbf16>
    %c0_5 = arith.constant 0 : index
    %c0_6 = arith.constant 0 : index
    %c0_7 = arith.constant 0 : index
    %6 = vector.load %arg5[%c0_5, %c0_6, %c0_7] : memref<1x15x16xbf16, #tpu.memory_space<vmem>>, vector<1x15x16xbf16>
    %7 = vector.shape_cast %6 : vector<1x15x16xbf16> to vector<15x16xbf16>
    %cst = arith.constant dense<0.000000e+00> : vector<256x16xf32>
    %8 = tpu.matmul %5, %7, %cst {dimension_numbers = #tpu.dot_dimension_numbers<[1], [0], [0], [1], [0, 0, 1, 1], [], []>} : vector<256x15xbf16>, vector<15x16xbf16>, vector<256x16xf32> -> vector<256x16xf32>
    %9 = arith.addf %3, %8 : vector<256x16xf32>
    %c0_8 = arith.constant 0 : index
    %c0_9 = arith.constant 0 : index
    %10 = vector.load %arg8[%c0_8, %c0_9] : memref<256x16xf32, #tpu.memory_space<vmem>>, vector<256x16xf32>
    tpu.vector_store %arg8[%c0_8, %c0_9], %9 {strides = array<i32>} : memref<256x16xf32, #tpu.memory_space<vmem>>, vector<256x16xf32>,
    %c0_i32_10 = arith.constant 0 : i32
    %11 = arith.cmpi eq, %arg3, %c0_i32_10 : i32
    %12 = arith.extui %11 : i1 to i32
    %c0_i32_11 = arith.constant 0 : i32
    %13 = arith.cmpi ne, %12, %c0_i32_11 : i32
    scf.if %13 {
      %c0_12 = arith.constant 0 : index
      %c0_13 = arith.constant 0 : index
      %14 = vector.load %arg8[%c0_12, %c0_13] : memref<256x16xf32, #tpu.memory_space<vmem>>, vector<256x16xf32>
      %c0_14 = arith.constant 0 : index
      %c0_15 = arith.constant 0 : index
      %c0_16 = arith.constant 0 : index
      %15 = vector.load %arg6[%c0_14, %c0_15, %c0_16] : memref<1x1x16xf32, #tpu.memory_space<vmem>>, vector<1x1x16xf32>
      %16 = vector.shape_cast %15 : vector<1x1x16xf32> to vector<1x16xf32>
      %17 = vector.broadcast %16 : vector<1x16xf32> to vector<256x16xf32>
      %18 = arith.addf %14, %17 : vector<256x16xf32>
      %cst_17 = arith.constant 0.000000e+00 : f32
      %19 = vector.broadcast %cst_17 : f32 to vector<256x16xf32>
      %20 = arith.cmpf oge, %18, %19 : vector<256x16xf32>
      %cst_18 = arith.constant 1.000000e-01 : f32
      %21 = vector.broadcast %cst_18 : f32 to vector<256x16xf32>
      %22 = arith.mulf %21, %18 : vector<256x16xf32>
      %23 = arith.select %20, %18, %22 : vector<256x16xi1>, vector<256x16xf32>
      %c0_19 = arith.constant 0 : index
      %c0_20 = arith.constant 0 : index
      %c0_21 = arith.constant 0 : index
      %24 = vector.load %arg7[%c0_19, %c0_20, %c0_21] : memref<1x256x16xf32, #tpu.memory_space<vmem>>, vector<1x256x16xf32>
      %25 = vector.shape_cast %24 : vector<1x256x16xf32> to vector<256x16xf32>
      %26 = vector.shape_cast %23 : vector<256x16xf32> to vector<1x256x16xf32>
      tpu.vector_store %arg7[%c0_19, %c0_20, %c0_21], %26 {strides = array<i32>} : memref<1x256x16xf32, #tpu.memory_space<vmem>>, vector<1x256x16xf32>,
    } else {
    }
    return
  }
  func.func @transform_0(%arg0: i32, %arg1: i32, %arg2: i32, %arg3: i32) -> (i32, i32, i32) {
    %c0_i32 = arith.constant 0 : i32
    return %arg0, %arg1, %arg3 : i32, i32, i32
  }
  func.func @transform_1(%arg0: i32, %arg1: i32, %arg2: i32, %arg3: i32) -> (i32, i32, i32) {
    %c0_i32 = arith.constant 0 : i32
    return %arg0, %arg3, %arg2 : i32, i32, i32
  }
  func.func @transform_2(%arg0: i32, %arg1: i32, %arg2: i32, %arg3: i32) -> (i32, i32, i32) {
    %c0_i32 = arith.constant 0 : i32
    %c0_i32_0 = arith.constant 0 : i32
    return %arg0, %c0_i32, %arg2 : i32, i32, i32
  }
  func.func @transform_3(%arg0: i32, %arg1: i32, %arg2: i32, %arg3: i32) -> (i32, i32, i32) {
    %c0_i32 = arith.constant 0 : i32
    return %arg0, %arg1, %arg2 : i32, i32, i32
  }
}

</mosaic_0001>

<bundles_post_ra>
// kernel: tpu_custom_call.1
= control target key start
LH: loop header
LB: loop body
LE: loop exit
PB: predicated region body
PF: predicated region fallthrough
CT: control target
= control target key end

     0   :  { %vm252_vm0 = vcmask 1046528   ;;  %vm253_vm1 = vcmask 1047552   ;;  %vm203_vm2 = vcmask 121856   ;;  %v797_v1 = vmov 65535   ;;  %s1120_s1 = inlined_call_operand.vmem [shape: bf16[1,15,16], index: 1, kind: input, shape index: {}]   ;;  %s1121_s0 = inlined_call_operand.vmem [shape: bf16[1,256,15], index: 0, kind: input, shape index: {}]   ;;  %s1122_s2 = inlined_call_operand.vmem [shape: f32[1,1,16], index: 2, kind: input, shape index: {}]   ;;  %s1123_s3 = inlined_call_operand.vmem [shape: f32[1,256,16], index: 3, kind: output, shape index: {}]  }
   0x1   :  { %v780_v0 = vld [vmem:[%s1120_s1] sm:$0xff]   ;;  %v254_v2 = vsel %vm252_vm0, 4294967295, %v797_v1  ;;  %vm19_vm3 = vcmask 130048   ;;  %v783_v7 = vld [vmem:[%s1121_s0 + $0x8] sm:$0xff]   ;;  %v798_v9 = vmov 0.0   ;;  %v785_v10 = vld [vmem:[%s1121_s0 + $0x10] sm:$0xff]  }
   0x2   :  { %v255_v3 = vsel %vm253_vm1, %v254_v2, 0  ;;  %v781_v4 = vld [vmem:[%s1121_s0] sm:$0xff]   ;;  %v784_v8 = vld [vmem:[%s1121_s0 + $0x48] sm:$0xff]   ;;  %22 = vst.msk [vmem:[#allocation2 + $0x10] sm:$0xff] %vm19_vm3, %v798_v9  ;;  %20 = vst.msk [vmem:[#allocation2] sm:$0xff] %vm19_vm3, %v798_v9 }
   0x3   :  { %v257_v5 = vand.u32 %v780_v0, %v255_v3  ;;  %v782_v6 = vld [vmem:[%s1121_s0 + $0x40] sm:$0xff]   ;;  %744 = vmatprep.mubr.msk.bf16.mxu0 %vm203_vm2, %v781_v4  ;;  %21 = vst.msk [vmem:[#allocation2 + $0x8] sm:$0xff] %vm19_vm3, %v798_v9  ;;  %23 = vst.msk [vmem:[#allocation2 + $0x18] sm:$0xff] %vm19_vm3, %v798_v9  ;;  %v786_v11 = vld [vmem:[%s1121_s0 + $0x50] sm:$0xff]  }
   0x4   :  { %24 = vst.msk [vmem:[#allocation2 + $0x20] sm:$0xff] %vm19_vm3, %v798_v9  ;;  %25 = vst.msk [vmem:[#allocation2 + $0x28] sm:$0xff] %vm19_vm3, %v798_v9  ;;  %760 = vmatprep.mubr.msk.bf16.mxu1 %vm203_vm2, %v782_v6  ;;  %v787_v12 = vld [vmem:[%s1121_s0 + $0x18] sm:$0xff]   ;;  %v789_v14 = vld [vmem:[%s1121_s0 + $0x20] sm:$0xff]  }
   0x5   :  { %742 = vmatprep.subr.bf16.mxu0 %v257_v5  ;;  %776 = vmatprep.subr.bf16.mxu1 %v257_v5  ;;  %26 = vst.msk [vmem:[#allocation2 + $0x30] sm:$0xff] %vm19_vm3, %v798_v9  ;;  %27 = vst.msk [vmem:[#allocation2 + $0x38] sm:$0xff] %vm19_vm3, %v798_v9  ;;  %v788_v13 = vld [vmem:[%s1121_s0 + $0x58] sm:$0xff]   ;;  %v790_v15 = vld [vmem:[%s1121_s0 + $0x60] sm:$0xff]  }
   0x6   :  { %28 = vst.msk [vmem:[#allocation2 + $0x40] sm:$0xff] %vm19_vm3, %v798_v9  ;;  %29 = vst.msk [vmem:[#allocation2 + $0x48] sm:$0xff] %vm19_vm3, %v798_v9  ;;  %743 = vmatpush3.bf16.msra.mxu0 %v257_v5  ;;  %777 = vmatpush3.bf16.msra.mxu1 %v257_v5  ;;  %v791_v16 = vld [vmem:[%s1121_s0 + $0x28] sm:$0xff]   ;;  %v793_v18 = vld [vmem:[%s1121_s0 + $0x30] sm:$0xff]  }
   0x7   :  { %30 = vst.msk [vmem:[#allocation2 + $0x50] sm:$0xff] %vm19_vm3, %v798_v9  ;;  %31 = vst.msk [vmem:[#allocation2 + $0x58] sm:$0xff] %vm19_vm3, %v798_v9  ;;  %v792_v17 = vld [vmem:[%s1121_s0 + $0x68] sm:$0xff]   ;;  %v794_v19 = vld [vmem:[%s1121_s0 + $0x70] sm:$0xff]  }
   0x8   :  { %32 = vst.msk [vmem:[#allocation2 + $0x60] sm:$0xff] %vm19_vm3, %v798_v9  ;;  %33 = vst.msk [vmem:[#allocation2 + $0x68] sm:$0xff] %vm19_vm3, %v798_v9  ;;  %v795_v20 = vld [vmem:[%s1121_s0 + $0x38] sm:$0xff]   ;;  %v929_v50 = vld [vmem:[%s1122_s2] ss:$0 sm:$0xff] }
   0x9   :  { %34 = vst.msk [vmem:[#allocation2 + $0x70] sm:$0xff] %vm19_vm3, %v798_v9  ;;  %35 = vst.msk [vmem:[#allocation2 + $0x78] sm:$0xff] %vm19_vm3, %v798_v9  ;;  %745 = vmatmul.mubr.msk.bf16.vlgmr.msra.gmra.mrb[0].mxu0 %vm203_vm2, %v783_v7  ;;  %761 = vmatmul.mubr.msk.bf16.vlgmr.msra.gmra.mrb[0].mxu1 %vm203_vm2, %v784_v8  ;;  %v796_v21 = vld [vmem:[%s1121_s0 + $0x78] sm:$0xff]   ;;  %v54_v22 = vld [vmem:[#allocation2 + $0x10] sm:$0xff] }
   0xa   :  { %36 = vst.msk [vmem:[#allocation2 + $0x80] sm:$0xff] %vm19_vm3, %v798_v9  ;;  %37 = vst.msk [vmem:[#allocation2 + $0x88] sm:$0xff] %vm19_vm3, %v798_v9  ;;  %748 = vmatprep.mubr.msk.bf16.mxu0 %vm203_vm2, %v785_v10  ;;  %764 = vmatprep.mubr.msk.bf16.mxu1 %vm203_vm2, %v786_v11  ;;  %v52_v24 = vld [vmem:[#allocation2] sm:$0xff]  ;;  %v55_v28 = vld [vmem:[#allocation2 + $0x18] sm:$0xff] }
   0xb   :  { %38 = vst.msk [vmem:[#allocation2 + $0x90] sm:$0xff] %vm19_vm3, %v798_v9  ;;  %39 = vst.msk [vmem:[#allocation2 + $0x98] sm:$0xff] %vm19_vm3, %v798_v9  ;;  %v53_v34 = vld [vmem:[#allocation2 + $0x8] sm:$0xff]  ;;  %v56_v48 = vld [vmem:[#allocation2 + $0x20] sm:$0xff] }
   0xc   :  { %40 = vst.msk [vmem:[#allocation2 + $0xa0] sm:$0xff] %vm19_vm3, %v798_v9  ;;  %41 = vst.msk [vmem:[#allocation2 + $0xa8] sm:$0xff] %vm19_vm3, %v798_v9  ;;  %v58_v46 = vld [vmem:[#allocation2 + $0x30] sm:$0xff]  ;;  %v59_v53 = vld [vmem:[#allocation2 + $0x38] sm:$0xff] }
   0xd   :  { %42 = vst.msk [vmem:[#allocation2 + $0xb0] sm:$0xff] %vm19_vm3, %v798_v9  ;;  %43 = vst.msk [vmem:[#allocation2 + $0xb8] sm:$0xff] %vm19_vm3, %v798_v9  ;;  %v57_v59 = vld [vmem:[#allocation2 + $0x28] sm:$0xff] }
   0xe   :  { %44 = vst.msk [vmem:[#allocation2 + $0xc0] sm:$0xff] %vm19_vm3, %v798_v9  ;;  %45 = vst.msk [vmem:[#allocation2 + $0xc8] sm:$0xff] %vm19_vm3, %v798_v9 }
   0xf   :  { %46 = vst.msk [vmem:[#allocation2 + $0xd0] sm:$0xff] %vm19_vm3, %v798_v9  ;;  %47 = vst.msk [vmem:[#allocation2 + $0xd8] sm:$0xff] %vm19_vm3, %v798_v9 }
  0x10   :  { %48 = vst.msk [vmem:[#allocation2 + $0xe0] sm:$0xff] %vm19_vm3, %v798_v9  ;;  %49 = vst.msk [vmem:[#allocation2 + $0xe8] sm:$0xff] %vm19_vm3, %v798_v9 }
  0x11   :  { %50 = vst.msk [vmem:[#allocation2 + $0xf0] sm:$0xff] %vm19_vm3, %v798_v9  ;;  %51 = vst.msk [vmem:[#allocation2 + $0xf8] sm:$0xff] %vm19_vm3, %v798_v9  ;;  %749 = vmatmul.mubr.msk.bf16.gmra.mrb[4].mxu0 %vm203_vm2, %v787_v12  ;;  %765 = vmatmul.mubr.msk.bf16.gmra.mrb[4].mxu1 %vm203_vm2, %v788_v13  ;;  %v68_v25 = vld [vmem:[#allocation2 + $0x80] sm:$0xff]  ;;  %v69_v35 = vld [vmem:[#allocation2 + $0x88] sm:$0xff] }
  0x12   :  { %752 = vmatprep.mubr.msk.bf16.mxu0 %vm203_vm2, %v789_v14  ;;  %768 = vmatprep.mubr.msk.bf16.mxu1 %vm203_vm2, %v790_v15  ;;  %v70_v23 = vld [vmem:[#allocation2 + $0x90] sm:$0xff]  ;;  %v71_v29 = vld [vmem:[#allocation2 + $0x98] sm:$0xff] }
  0x13   :  { %v72_v49 = vld [vmem:[#allocation2 + $0xa0] sm:$0xff]  ;;  %v73_v60 = vld [vmem:[#allocation2 + $0xa8] sm:$0xff] }
  0x14   :  { %v74_v47 = vld [vmem:[#allocation2 + $0xb0] sm:$0xff]  ;;  %v75_v54 = vld [vmem:[#allocation2 + $0xb8] sm:$0xff] }
  0x19   :  { %753 = vmatmul.mubr.msk.bf16.gmra.mrb[8].mxu0 %vm203_vm2, %v791_v16  ;;  %769 = vmatmul.mubr.msk.bf16.gmra.mrb[8].mxu1 %vm203_vm2, %v792_v17 }
  0x1a   :  { %756 = vmatprep.mubr.msk.bf16.mxu0 %vm203_vm2, %v793_v18  ;;  %772 = vmatprep.mubr.msk.bf16.mxu1 %vm203_vm2, %v794_v19 }
  0x21   :  { %757 = vmatmul.mubr.msk.bf16.gmra.mrb[12].mxu0 %vm203_vm2, %v795_v20  ;;  %773 = vmatmul.mubr.msk.bf16.gmra.mrb[12].mxu1 %vm203_vm2, %v796_v21 }
  0xdc   :  { %v746_v26 = vpop.f32.mrb[0].mxu0  ;;  %v762_v27 = vpop.f32.mrb[0].mxu1 }
  0xdd   :  { %v422_v30 = vadd.f32 %v746_v26, %v54_v22  ;;  %v438_v31 = vadd.f32 %v762_v27, %v70_v23  ;;  %v293_v32 = vpop.f32.mrb[1].mxu0  ;;  %v357_v33 = vpop.f32.mrb[1].mxu1 }
  0xde   :  { %v420_v36 = vadd.f32 %v293_v32, %v52_v24  ;;  %v436_v37 = vadd.f32 %v357_v33, %v68_v25  ;;  %v747_v38 = vpop.f32.mrb[2].mxu0  ;;  %v763_v39 = vpop.f32.mrb[2].mxu1  ;;  %v78_v33 = vld [vmem:[#allocation2 + $0xd0] sm:$0xff] }
  0xdf   :  { %455 = vst.msk [vmem:[#allocation2 + $0x10] sm:$0xff] %vm19_vm3, %v422_v30  ;;  %471 = vst.msk [vmem:[#allocation2 + $0x90] sm:$0xff] %vm19_vm3, %v438_v31  ;;  %v423_v40 = vadd.f32 %v747_v38, %v55_v28  ;;  %v439_v41 = vadd.f32 %v763_v39, %v71_v29  ;;  %v296_v42 = vpop.f32.mrb[3].mxu0  ;;  %v360_v43 = vpop.f32.mrb[3].mxu1  ;;  %v62_v31 = vld [vmem:[#allocation2 + $0x50] sm:$0xff] }
  0xe0   :  { %453 = vst.msk [vmem:[#allocation2] sm:$0xff] %vm19_vm3, %v420_v36  ;;  %469 = vst.msk [vmem:[#allocation2 + $0x80] sm:$0xff] %vm19_vm3, %v436_v37  ;;  %v421_v44 = vadd.f32 %v296_v42, %v53_v34  ;;  %v437_v45 = vadd.f32 %v360_v43, %v69_v35 }
  0xe1   :  { %456 = vst.msk [vmem:[#allocation2 + $0x18] sm:$0xff] %vm19_vm3, %v423_v40  ;;  %472 = vst.msk [vmem:[#allocation2 + $0x98] sm:$0xff] %vm19_vm3, %v439_v41 }
  0xe2   :  { %454 = vst.msk [vmem:[#allocation2 + $0x8] sm:$0xff] %vm19_vm3, %v421_v44  ;;  %470 = vst.msk [vmem:[#allocation2 + $0x88] sm:$0xff] %vm19_vm3, %v437_v45 }
  0xe4   :  { %v750_v51 = vpop.f32.mrb[4].mxu0  ;;  %v766_v52 = vpop.f32.mrb[4].mxu1 }
  0xe5   :  { %v426_v55 = vadd.f32 %v750_v51, %v58_v46  ;;  %v442_v56 = vadd.f32 %v766_v52, %v74_v47  ;;  %v309_v57 = vpop.f32.mrb[5].mxu0  ;;  %v373_v58 = vpop.f32.mrb[5].mxu1 }
  0xe6   :  { %v490_v61 = vld [vmem:[#allocation2 + $0x10] sm:$0xff]  ;;  %v424_v63 = vadd.f32 %v309_v57, %v56_v48  ;;  %v440_v0 = vadd.f32 %v373_v58, %v72_v49  ;;  %v751_v1 = vpop.f32.mrb[6].mxu0  ;;  %v767_v2 = vpop.f32.mrb[6].mxu1 }
  0xe7   :  { %v506_v62 = vld [vmem:[#allocation2 + $0x90] sm:$0xff]  ;;  %v529_v3 = vadd.f32 %v929_v50, %v490_v61  ;;  %v488_v5 = vld [vmem:[#allocation2] sm:$0xff]  ;;  %459 = vst.msk [vmem:[#allocation2 + $0x30] sm:$0xff] %vm19_vm3, %v426_v55  ;;  %475 = vst.msk [vmem:[#allocation2 + $0xb0] sm:$0xff] %vm19_vm3, %v442_v56  ;;  %v427_v7 = vadd.f32 %v751_v1, %v59_v53  ;;  %v443_v8 = vadd.f32 %v767_v2, %v75_v54  ;;  %v312_v9 = vpop.f32.mrb[7].mxu0  ;;  %v376_v10 = vpop.f32.mrb[7].mxu1 }
  0xe8   :  { %v545_v4 = vadd.f32 %v929_v50, %v506_v62  ;;  %v504_v6 = vld [vmem:[#allocation2 + $0x80] sm:$0xff]  ;;  %v527_v11 = vadd.f32 %v929_v50, %v488_v5  ;;  %v491_v13 = vld [vmem:[#allocation2 + $0x18] sm:$0xff]  ;;  %457 = vst.msk [vmem:[#allocation2 + $0x20] sm:$0xff] %vm19_vm3, %v424_v63  ;;  %473 = vst.msk [vmem:[#allocation2 + $0xa0] sm:$0xff] %vm19_vm3, %v440_v0  ;;  %v425_v15 = vadd.f32 %v312_v9, %v57_v59 }
  0xe9   :  { %v543_v12 = vadd.f32 %v929_v50, %v504_v6  ;;  %v507_v14 = vld [vmem:[#allocation2 + $0x98] sm:$0xff]  ;;  %v441_v16 = vadd.f32 %v376_v10, %v73_v60  ;;  %vm561_vm4 = vcmp.ge.f32.partialorder %v529_v3, 0.0  ;;  %v593_v17 = vmul.f32 0.1, %v529_v3  ;;  %460 = vst.msk [vmem:[#allocation2 + $0x38] sm:$0xff] %vm19_vm3, %v427_v7  ;;  %476 = vst.msk [vmem:[#allocation2 + $0xb8] sm:$0xff] %vm19_vm3, %v443_v8 }
  0xea   :  { %vm577_vm5 = vcmp.ge.f32.partialorder %v545_v4, 0.0  ;;  %v609_v18 = vmul.f32 0.1, %v545_v4  ;;  %vm559_vm6 = vcmp.ge.f32.partialorder %v527_v11, 0.0  ;;  %v591_v19 = vmul.f32 0.1, %v527_v11 }
  0xeb   :  { %vm575_vm7 = vcmp.ge.f32.partialorder %v543_v12, 0.0  ;;  %v607_v20 = vmul.f32 0.1, %v543_v12  ;;  %458 = vst.msk [vmem:[#allocation2 + $0x28] sm:$0xff] %vm19_vm3, %v425_v15  ;;  %474 = vst.msk [vmem:[#allocation2 + $0xa8] sm:$0xff] %vm19_vm3, %v441_v16  ;;  %v625_v21 = vsel %vm561_vm4, %v529_v3, %v593_v17  ;;  %v530_v23 = vadd.f32 %v929_v50, %v491_v13  ;;  %v489_v25 = vld [vmem:[#allocation2 + $0x8] sm:$0xff] }
  0xec   :  { %v641_v22 = vsel %vm577_vm5, %v545_v4, %v609_v18  ;;  %v546_v24 = vadd.f32 %v929_v50, %v507_v14  ;;  %v505_v26 = vld [vmem:[#allocation2 + $0x88] sm:$0xff]  ;;  %657 = vst.msk [vmem:[%s1123_s3 + $0x10] sm:$0xff] %vm19_vm3, %v625_v21  ;;  %v623_v27 = vsel %vm559_vm6, %v527_v11, %v591_v19  ;;  %v528_v29 = vadd.f32 %v929_v50, %v489_v25  ;;  %v754_v32 = vpop.f32.mrb[8].mxu0  ;;  %v770_v34 = vpop.f32.mrb[8].mxu1  ;;  %v60_v0 = vld [vmem:[#allocation2 + $0x40] sm:$0xff]  ;;  %v63_v6 = vld [vmem:[#allocation2 + $0x58] sm:$0xff] }
  0xed   :  { %673 = vst.msk [vmem:[%s1123_s3 + $0x90] sm:$0xff] %vm19_vm3, %v641_v22  ;;  %v639_v28 = vsel %vm575_vm7, %v543_v12, %v607_v20  ;;  %v544_v30 = vadd.f32 %v929_v50, %v505_v26  ;;  %655 = vst.msk [vmem:[%s1123_s3] sm:$0xff] %vm19_vm3, %v623_v27  ;;  %vm562_vm8 = vcmp.ge.f32.partialorder %v530_v23, 0.0  ;;  %v594_v35 = vmul.f32 0.1, %v530_v23  ;;  %v325_v46 = vpop.f32.mrb[9].mxu0 }
  0xee   :  { %671 = vst.msk [vmem:[%s1123_s3 + $0x80] sm:$0xff] %vm19_vm3, %v639_v28  ;;  %vm578_vm9 = vcmp.ge.f32.partialorder %v546_v24, 0.0  ;;  %v610_v36 = vmul.f32 0.1, %v546_v24  ;;  %vm560_vm10 = vcmp.ge.f32.partialorder %v528_v29, 0.0  ;;  %v494_v41 = vld [vmem:[#allocation2 + $0x30] sm:$0xff]  ;;  %v430_v44 = vadd.f32 %v754_v32, %v62_v31 }
  0xef   :  { %v592_v37 = vmul.f32 0.1, %v528_v29  ;;  %vm576_vm11 = vcmp.ge.f32.partialorder %v544_v30, 0.0  ;;  %v608_v38 = vmul.f32 0.1, %v544_v30  ;;  %v626_v39 = vsel %vm562_vm8, %v530_v23, %v594_v35  ;;  %v510_v42 = vld [vmem:[#allocation2 + $0xb0] sm:$0xff] }
  0xf0   :  { %v642_v40 = vsel %vm578_vm9, %v546_v24, %v610_v36  ;;  %v492_v43 = vld [vmem:[#allocation2 + $0x20] sm:$0xff]  ;;  %v446_v45 = vadd.f32 %v770_v34, %v78_v33  ;;  %v963_v47 = vpop.f32.mrb[9].mxu1  ;;  %658 = vst.msk [vmem:[%s1123_s3 + $0x18] sm:$0xff] %vm19_vm3, %v626_v39  ;;  %v533_v51 = vadd.f32 %v929_v50, %v494_v41  ;;  %v549_v52 = vadd.f32 %v929_v50, %v510_v42  ;;  %v495_v54 = vld [vmem:[#allocation2 + $0x38] sm:$0xff]  ;;  %v755_v56 = vpop.f32.mrb[10].mxu0  ;;  %v61_v13 = vld [vmem:[#allocation2 + $0x48] sm:$0xff] }
  0xf1   :  { %674 = vst.msk [vmem:[%s1123_s3 + $0x98] sm:$0xff] %vm19_vm3, %v642_v40  ;;  %v624_v48 = vsel %vm560_vm10, %v528_v29, %v592_v37  ;;  %v640_v49 = vsel %vm576_vm11, %v544_v30, %v608_v38  ;;  %v508_v53 = vld [vmem:[#allocation2 + $0xa0] sm:$0xff]  ;;  %v511_v55 = vld [vmem:[#allocation2 + $0xb8] sm:$0xff]  ;;  %v771_v57 = vpop.f32.mrb[10].mxu1  ;;  %v531_v58 = vadd.f32 %v929_v50, %v492_v43  ;;  %v534_v60 = vadd.f32 %v929_v50, %v495_v54  ;;  %v328_v1 = vpop.f32.mrb[11].mxu0  ;;  %v77_v19 = vld [vmem:[#allocation2 + $0xc8] sm:$0xff] }
  0xf2   :  { %656 = vst.msk [vmem:[%s1123_s3 + $0x8] sm:$0xff] %vm19_vm3, %v624_v48  ;;  %672 = vst.msk [vmem:[%s1123_s3 + $0x88] sm:$0xff] %vm19_vm3, %v640_v49  ;;  %v547_v59 = vadd.f32 %v929_v50, %v508_v53  ;;  %v550_v61 = vadd.f32 %v929_v50, %v511_v55  ;;  %v493_v62 = vld [vmem:[#allocation2 + $0x28] sm:$0xff]  ;;  %v392_v2 = vpop.f32.mrb[11].mxu1  ;;  %vm565_vm12 = vcmp.ge.f32.partialorder %v533_v51, 0.0  ;;  %vm581_vm13 = vcmp.ge.f32.partialorder %v549_v52, 0.0 }
  0xf3   :  { %v509_v63 = vld [vmem:[#allocation2 + $0xa8] sm:$0xff]  ;;  %463 = vst.msk [vmem:[#allocation2 + $0x50] sm:$0xff] %vm19_vm3, %v430_v44  ;;  %479 = vst.msk [vmem:[#allocation2 + $0xd0] sm:$0xff] %vm19_vm3, %v446_v45  ;;  %v597_v3 = vmul.f32 0.1, %v533_v51  ;;  %v76_v5 = vld [vmem:[#allocation2 + $0xc0] sm:$0xff]  ;;  %v532_v23 = vadd.f32 %v929_v50, %v493_v62  ;;  %v428_v25 = vadd.f32 %v325_v46, %v60_v0  ;;  %v431_v33 = vadd.f32 %v755_v56, %v63_v6 }
  0xf4   :  { %v613_v4 = vmul.f32 0.1, %v549_v52  ;;  %v79_v7 = vld [vmem:[#allocation2 + $0xd8] sm:$0xff]  ;;  %vm563_vm14 = vcmp.ge.f32.partialorder %v531_v58, 0.0  ;;  %v595_v8 = vmul.f32 0.1, %v531_v58  ;;  %v548_v24 = vadd.f32 %v929_v50, %v509_v63 }
  0xf5   :  { %vm579_vm15 = vcmp.ge.f32.partialorder %v547_v59, 0.0  ;;  %v611_v9 = vmul.f32 0.1, %v547_v59  ;;  %v629_v10 = vsel %vm565_vm12, %v533_v51, %v597_v3  ;;  %vm566_vm0 = vcmp.ge.f32.partialorder %v534_v60, 0.0  ;;  %v758_v14 = vpop.f32.mrb[12].mxu0  ;;  %v774_v15 = vpop.f32.mrb[12].mxu1 }
  0xf6   :  { %v645_v11 = vsel %vm581_vm13, %v549_v52, %v613_v4  ;;  %v598_v12 = vmul.f32 0.1, %v534_v60  ;;  %661 = vst.msk [vmem:[%s1123_s3 + $0x30] sm:$0xff] %vm19_vm3, %v629_v10  ;;  %v627_v16 = vsel %vm563_vm14, %v531_v58, %v595_v8  ;;  %vm582_vm1 = vcmp.ge.f32.partialorder %v550_v61, 0.0  ;;  %v341_v20 = vpop.f32.mrb[13].mxu0  ;;  %v405_v21 = vpop.f32.mrb[13].mxu1 }
  0xf7   :  { %677 = vst.msk [vmem:[%s1123_s3 + $0xb0] sm:$0xff] %vm19_vm3, %v645_v11  ;;  %v643_v17 = vsel %vm579_vm15, %v547_v59, %v611_v9  ;;  %v614_v18 = vmul.f32 0.1, %v550_v61  ;;  %659 = vst.msk [vmem:[%s1123_s3 + $0x20] sm:$0xff] %vm19_vm3, %v627_v16  ;;  %v66_v26 = vld [vmem:[#allocation2 + $0x70] sm:$0xff]  ;;  %v64_v28 = vld [vmem:[#allocation2 + $0x60] sm:$0xff]  ;;  %v444_v32 = vadd.f32 %v963_v47, %v76_v5  ;;  %v447_v34 = vadd.f32 %v771_v57, %v79_v7 }
  0xf8   :  { %675 = vst.msk [vmem:[%s1123_s3 + $0xa0] sm:$0xff] %vm19_vm3, %v643_v17  ;;  %v630_v22 = vsel %vm566_vm0, %v534_v60, %v598_v12  ;;  %v82_v27 = vld [vmem:[#allocation2 + $0xf0] sm:$0xff]  ;;  %v759_v29 = vpop.f32.mrb[14].mxu0  ;;  %v775_v30 = vpop.f32.mrb[14].mxu1  ;;  %v80_v35 = vld [vmem:[#allocation2 + $0xe0] sm:$0xff]  ;;  %v67_v36 = vld [vmem:[#allocation2 + $0x78] sm:$0xff]  ;;  %v429_v44 = vadd.f32 %v328_v1, %v61_v13  ;;  %v445_v45 = vadd.f32 %v392_v2, %v77_v19  ;;  %v434_v46 = vadd.f32 %v758_v14, %v66_v26 }
  0xf9   :  { %662 = vst.msk [vmem:[%s1123_s3 + $0x38] sm:$0xff] %vm19_vm3, %v630_v22  ;;  %v646_v31 = vsel %vm582_vm1, %v550_v61, %v614_v18  ;;  %v83_v37 = vld [vmem:[#allocation2 + $0xf8] sm:$0xff]  ;;  %v344_v38 = vpop.f32.mrb[15].mxu0  ;;  %v408_v39 = vpop.f32.mrb[15].mxu1  ;;  %vm564_vm2 = vcmp.ge.f32.partialorder %v532_v23, 0.0  ;;  %vm580_vm4 = vcmp.ge.f32.partialorder %v548_v24, 0.0  ;;  %v450_v47 = vadd.f32 %v774_v15, %v82_v27 }
  0xfa   :  { %678 = vst.msk [vmem:[%s1123_s3 + $0xb8] sm:$0xff] %vm19_vm3, %v646_v31  ;;  %v596_v40 = vmul.f32 0.1, %v532_v23  ;;  %v612_v41 = vmul.f32 0.1, %v548_v24  ;;  %461 = vst.msk [vmem:[#allocation2 + $0x40] sm:$0xff] %vm19_vm3, %v428_v25  ;;  %v432_v55 = vadd.f32 %v341_v20, %v64_v28  ;;  %v448_v56 = vadd.f32 %v405_v21, %v80_v35 }
  0xfb   :  { %v498_v42 = vld [vmem:[#allocation2 + $0x50] sm:$0xff]  ;;  %477 = vst.msk [vmem:[#allocation2 + $0xc0] sm:$0xff] %vm19_vm3, %v444_v32  ;;  %464 = vst.msk [vmem:[#allocation2 + $0x58] sm:$0xff] %vm19_vm3, %v431_v33  ;;  %v65_v53 = vld [vmem:[#allocation2 + $0x68] sm:$0xff]  ;;  %v435_v57 = vadd.f32 %v759_v29, %v67_v36  ;;  %v451_v58 = vadd.f32 %v775_v30, %v83_v37 }
  0xfc   :  { %v514_v43 = vld [vmem:[#allocation2 + $0xd0] sm:$0xff]  ;;  %480 = vst.msk [vmem:[#allocation2 + $0xd8] sm:$0xff] %vm19_vm3, %v447_v34  ;;  %v628_v48 = vsel %vm564_vm2, %v532_v23, %v596_v40  ;;  %v644_v49 = vsel %vm580_vm4, %v548_v24, %v612_v41  ;;  %v537_v51 = vadd.f32 %v929_v50, %v498_v42  ;;  %v81_v54 = vld [vmem:[#allocation2 + $0xe8] sm:$0xff]  ;;  %462 = vst.msk [vmem:[#allocation2 + $0x48] sm:$0xff] %vm19_vm3, %v429_v44 }
  0xfd   :  { %v553_v52 = vadd.f32 %v929_v50, %v514_v43  ;;  %660 = vst.msk [vmem:[%s1123_s3 + $0x28] sm:$0xff] %vm19_vm3, %v628_v48  ;;  %676 = vst.msk [vmem:[%s1123_s3 + $0xa8] sm:$0xff] %vm19_vm3, %v644_v49  ;;  %v433_v61 = vadd.f32 %v344_v38, %v65_v53  ;;  %v449_v62 = vadd.f32 %v408_v39, %v81_v54 }
  0xfe   :  { %478 = vst.msk [vmem:[#allocation2 + $0xc8] sm:$0xff] %vm19_vm3, %v445_v45  ;;  %467 = vst.msk [vmem:[#allocation2 + $0x70] sm:$0xff] %vm19_vm3, %v434_v46  ;;  %vm569_vm5 = vcmp.ge.f32.partialorder %v537_v51, 0.0  ;;  %v601_v59 = vmul.f32 0.1, %v537_v51 }
  0xff   :  { %483 = vst.msk [vmem:[#allocation2 + $0xf0] sm:$0xff] %vm19_vm3, %v450_v47  ;;  %vm585_vm6 = vcmp.ge.f32.partialorder %v553_v52, 0.0  ;;  %v617_v60 = vmul.f32 0.1, %v553_v52  ;;  %465 = vst.msk [vmem:[#allocation2 + $0x60] sm:$0xff] %vm19_vm3, %v432_v55 }
 0x100   :  { %481 = vst.msk [vmem:[#allocation2 + $0xe0] sm:$0xff] %vm19_vm3, %v448_v56  ;;  %468 = vst.msk [vmem:[#allocation2 + $0x78] sm:$0xff] %vm19_vm3, %v435_v57  ;;  %v633_v63 = vsel %vm569_vm5, %v537_v51, %v601_v59 }
 0x101   :  { %484 = vst.msk [vmem:[#allocation2 + $0xf8] sm:$0xff] %vm19_vm3, %v451_v58  ;;  %v649_v0 = vsel %vm585_vm6, %v553_v52, %v617_v60  ;;  %665 = vst.msk [vmem:[%s1123_s3 + $0x50] sm:$0xff] %vm19_vm3, %v633_v63  ;;  %v496_v1 = vld [vmem:[#allocation2 + $0x40] sm:$0xff] }
 0x102   :  { %681 = vst.msk [vmem:[%s1123_s3 + $0xd0] sm:$0xff] %vm19_vm3, %v649_v0  ;;  %466 = vst.msk [vmem:[#allocation2 + $0x68] sm:$0xff] %vm19_vm3, %v433_v61  ;;  %v535_v2 = vadd.f32 %v929_v50, %v496_v1  ;;  %v512_v3 = vld [vmem:[#allocation2 + $0xc0] sm:$0xff]  ;;  %v499_v4 = vld [vmem:[#allocation2 + $0x58] sm:$0xff] }
 0x103   :  { %482 = vst.msk [vmem:[#allocation2 + $0xe8] sm:$0xff] %vm19_vm3, %v449_v62  ;;  %v515_v5 = vld [vmem:[#allocation2 + $0xd8] sm:$0xff]  ;;  %v551_v6 = vadd.f32 %v929_v50, %v512_v3  ;;  %v538_v7 = vadd.f32 %v929_v50, %v499_v4  ;;  %v497_v10 = vld [vmem:[#allocation2 + $0x48] sm:$0xff] }
 0x104   :  { %v554_v8 = vadd.f32 %v929_v50, %v515_v5  ;;  %vm567_vm7 = vcmp.ge.f32.partialorder %v535_v2, 0.0  ;;  %v599_v9 = vmul.f32 0.1, %v535_v2  ;;  %v536_v17 = vadd.f32 %v929_v50, %v497_v10 }
 0x105   :  { %v513_v11 = vld [vmem:[#allocation2 + $0xc8] sm:$0xff]  ;;  %v502_v12 = vld [vmem:[#allocation2 + $0x70] sm:$0xff]  ;;  %vm583_vm8 = vcmp.ge.f32.partialorder %v551_v6, 0.0  ;;  %v615_v13 = vmul.f32 0.1, %v551_v6  ;;  %vm570_vm9 = vcmp.ge.f32.partialorder %v538_v7, 0.0 }
 0x106   :  { %v602_v14 = vmul.f32 0.1, %v538_v7  ;;  %v631_v15 = vsel %vm567_vm7, %v535_v2, %v599_v9  ;;  %vm586_vm10 = vcmp.ge.f32.partialorder %v554_v8, 0.0  ;;  %v618_v16 = vmul.f32 0.1, %v554_v8  ;;  %v518_v18 = vld [vmem:[#allocation2 + $0xf0] sm:$0xff] }
 0x107   :  { %663 = vst.msk [vmem:[%s1123_s3 + $0x40] sm:$0xff] %vm19_vm3, %v631_v15  ;;  %v647_v19 = vsel %vm583_vm8, %v551_v6, %v615_v13  ;;  %v552_v21 = vadd.f32 %v929_v50, %v513_v11  ;;  %v541_v22 = vadd.f32 %v929_v50, %v502_v12  ;;  %v500_v23 = vld [vmem:[#allocation2 + $0x60] sm:$0xff]  ;;  %vm568_vm11 = vcmp.ge.f32.partialorder %v536_v17, 0.0  ;;  %v503_v28 = vld [vmem:[#allocation2 + $0x78] sm:$0xff] }
 0x108   :  { %v634_v20 = vsel %vm570_vm9, %v538_v7, %v602_v14  ;;  %679 = vst.msk [vmem:[%s1123_s3 + $0xc0] sm:$0xff] %vm19_vm3, %v647_v19  ;;  %v650_v24 = vsel %vm586_vm10, %v554_v8, %v618_v16  ;;  %v600_v25 = vmul.f32 0.1, %v536_v17  ;;  %v557_v26 = vadd.f32 %v929_v50, %v518_v18  ;;  %v516_v27 = vld [vmem:[#allocation2 + $0xe0] sm:$0xff]  ;;  %v519_v29 = vld [vmem:[#allocation2 + $0xf8] sm:$0xff] }
 0x109   :  { %666 = vst.msk [vmem:[%s1123_s3 + $0x58] sm:$0xff] %vm19_vm3, %v634_v20  ;;  %682 = vst.msk [vmem:[%s1123_s3 + $0xd8] sm:$0xff] %vm19_vm3, %v650_v24  ;;  %vm584_vm12 = vcmp.ge.f32.partialorder %v552_v21, 0.0  ;;  %v616_v30 = vmul.f32 0.1, %v552_v21  ;;  %vm573_vm13 = vcmp.ge.f32.partialorder %v541_v22, 0.0  ;;  %v539_v34 = vadd.f32 %v929_v50, %v500_v23 }
 0x10a   :  { %v605_v31 = vmul.f32 0.1, %v541_v22  ;;  %v632_v32 = vsel %vm568_vm11, %v536_v17, %v600_v25  ;;  %vm589_vm14 = vcmp.ge.f32.partialorder %v557_v26, 0.0  ;;  %v621_v33 = vmul.f32 0.1, %v557_v26  ;;  %v501_v39 = vld [vmem:[#allocation2 + $0x68] sm:$0xff] }
 0x10b   :  { %664 = vst.msk [vmem:[%s1123_s3 + $0x48] sm:$0xff] %vm19_vm3, %v632_v32  ;;  %v648_v35 = vsel %vm584_vm12, %v552_v21, %v616_v30  ;;  %v555_v37 = vadd.f32 %v929_v50, %v516_v27  ;;  %v542_v38 = vadd.f32 %v929_v50, %v503_v28  ;;  %vm571_vm15 = vcmp.ge.f32.partialorder %v539_v34, 0.0  ;;  %v517_v43 = vld [vmem:[#allocation2 + $0xe8] sm:$0xff] }
 0x10c   :  { %v637_v36 = vsel %vm573_vm13, %v541_v22, %v605_v31  ;;  %680 = vst.msk [vmem:[%s1123_s3 + $0xc8] sm:$0xff] %vm19_vm3, %v648_v35  ;;  %v653_v40 = vsel %vm589_vm14, %v557_v26, %v621_v33  ;;  %v603_v41 = vmul.f32 0.1, %v539_v34  ;;  %v558_v42 = vadd.f32 %v929_v50, %v519_v29 }
 0x10d   :  { %669 = vst.msk [vmem:[%s1123_s3 + $0x70] sm:$0xff] %vm19_vm3, %v637_v36  ;;  %685 = vst.msk [vmem:[%s1123_s3 + $0xf0] sm:$0xff] %vm19_vm3, %v653_v40  ;;  %vm587_vm0 = vcmp.ge.f32.partialorder %v555_v37, 0.0  ;;  %v619_v44 = vmul.f32 0.1, %v555_v37  ;;  %vm574_vm1 = vcmp.ge.f32.partialorder %v542_v38, 0.0  ;;  %v540_v48 = vadd.f32 %v929_v50, %v501_v39 }
 0x10e   :  { %v606_v45 = vmul.f32 0.1, %v542_v38  ;;  %v635_v46 = vsel %vm571_vm15, %v539_v34, %v603_v41  ;;  %vm590_vm2 = vcmp.ge.f32.partialorder %v558_v42, 0.0  ;;  %v622_v47 = vmul.f32 0.1, %v558_v42 }
 0x10f   :  { %667 = vst.msk [vmem:[%s1123_s3 + $0x60] sm:$0xff] %vm19_vm3, %v635_v46  ;;  %v651_v49 = vsel %vm587_vm0, %v555_v37, %v619_v44  ;;  %v556_v52 = vadd.f32 %v929_v50, %v517_v43  ;;  %vm572_vm4 = vcmp.ge.f32.partialorder %v540_v48, 0.0  ;;  %v604_v54 = vmul.f32 0.1, %v540_v48 }
 0x110   :  { %v638_v51 = vsel %vm574_vm1, %v542_v38, %v606_v45  ;;  %683 = vst.msk [vmem:[%s1123_s3 + $0xe0] sm:$0xff] %vm19_vm3, %v651_v49  ;;  %v654_v53 = vsel %vm590_vm2, %v558_v42, %v622_v47 }
 0x111   :  { %670 = vst.msk [vmem:[%s1123_s3 + $0x78] sm:$0xff] %vm19_vm3, %v638_v51  ;;  %686 = vst.msk [vmem:[%s1123_s3 + $0xf8] sm:$0xff] %vm19_vm3, %v654_v53  ;;  %vm588_vm5 = vcmp.ge.f32.partialorder %v556_v52, 0.0  ;;  %v620_v50 = vmul.f32 0.1, %v556_v52  ;;  %v636_v55 = vsel %vm572_vm4, %v540_v48, %v604_v54 }
 0x112   :  { %668 = vst.msk [vmem:[%s1123_s3 + $0x68] sm:$0xff] %vm19_vm3, %v636_v55 }
 0x113   :  { %v652_v56 = vsel %vm588_vm5, %v556_v52, %v620_v50 }
 0x114   :  { %684 = vst.msk [vmem:[%s1123_s3 + $0xe8] sm:$0xff] %vm19_vm3, %v652_v56 }

</bundles_post_ra>
